<compile_context>
chip_gen: v6e
topology: v6e:2x2x1
jax: 0.10.0
libtpu: 0.0.40
codegen_flags: <defaults>
</compile_context>

<pallas_src>
import functools

import jax
import jax.numpy as jnp
from jax import lax
from jax.experimental import pallas as pl
from jax.experimental.pallas import tpu as pltpu

# Module hyper-parameter defaults (FocalOHEMLowLoss.__init__).
FOCUSING_PARAM = 2.0
BALANCE_PARAM = 0.25
OHEM_PERCENT = 0.5
NUM_CLASSES = 2

LANES = 128
SUBLANES = 8
MAX_TILE_ROWS = 512


def _focal_kernel(x_ref, t_ref, o_ref, *, focusing_param, balance_param):
    """Elementwise focal BCE-with-logits loss on one lane-dense tile."""
    x = x_ref[...].astype(jnp.float32)
    t = t_ref[...].astype(jnp.float32)

    neg_x = -x
    max_val = jnp.maximum(neg_x, 0.0)
    # Numerically-stable BCE-with-logits (same expression as the PyTorch code).
    loss = x - x * t + max_val + jnp.log(
        jnp.exp(-max_val) + jnp.exp(neg_x - max_val))

    # invprobs = logsigmoid(-x * (2t - 1)); stable form min(z,0) - log(1+e^-|z|).
    z = x * (1.0 - 2.0 * t)
    invprobs = jnp.minimum(z, 0.0) - jnp.log(1.0 + jnp.exp(-jnp.abs(z)))

    focal = balance_param * jnp.exp(invprobs * focusing_param) * loss
    o_ref[...] = focal.astype(o_ref.dtype)


def focal_ohem_low_loss(output, target,
                        focusing_param=FOCUSING_PARAM,
                        balance_param=BALANCE_PARAM,
                        percent=OHEM_PERCENT,
                        num_classes=NUM_CLASSES):
    """output: [N, num_classes] float logits; target: [N] int class ids."""
    # one_hot(target, 2).type_as(target) -> used only in float arithmetic.
    t_onehot = (target[:, None] ==
                jnp.arange(num_classes, dtype=target.dtype)[None, :]
                ).astype(output.dtype)

    x = output.reshape(-1)
    t = t_onehot.reshape(-1)
    numel = x.shape[0]
    k = int(percent * numel)

    # Lane-dense padding to (rows_pad, 128) with rows_pad a multiple of the
    # tile height (itself a multiple of the 8-sublane granularity).
    rows = -(-numel // LANES)
    rows = -(-rows // SUBLANES) * SUBLANES
    tile_rows = min(rows, MAX_TILE_ROWS)
    rows_pad = -(-rows // tile_rows) * tile_rows
    padded = rows_pad * LANES

    x_p = jnp.pad(x, (0, padded - numel)).reshape(rows_pad, LANES)
    t_p = jnp.pad(t, (0, padded - numel)).reshape(rows_pad, LANES)

    kernel = functools.partial(_focal_kernel,
                               focusing_param=float(focusing_param),
                               balance_param=float(balance_param))

    focal = pl.pallas_call(
        kernel,
        out_shape=jax.ShapeDtypeStruct((rows_pad, LANES), jnp.float32),
        grid=(rows_pad // tile_rows,),
        in_specs=[
            pl.BlockSpec((tile_rows, LANES), lambda i: (i, 0)),
            pl.BlockSpec((tile_rows, LANES), lambda i: (i, 0)),
        ],
        out_specs=pl.BlockSpec((tile_rows, LANES), lambda i: (i, 0)),
        compiler_params=pltpu.CompilerParams(
            dimension_semantics=("parallel",)),
    )(x_p, t_p)

    flat = focal.reshape(-1)[:numel]   # drop padding before selection
    # TODO(synk): bottom-k selection + mean done with XLA top_k (no Pallas sort).
    lowest = -lax.top_k(-flat, k)[0]
    return jnp.mean(lowest)


def _reference(output, target,
               focusing_param=FOCUSING_PARAM,
               balance_param=BALANCE_PARAM,
               percent=OHEM_PERCENT,
               num_classes=NUM_CLASSES):
    """Pure-JAX mirror of the PyTorch forward."""
    t = (target[:, None] == jnp.arange(num_classes, dtype=target.dtype)[None, :]
         ).astype(output.dtype)
    x = output.reshape(-1).astype(jnp.float32)
    t = t.reshape(-1).astype(jnp.float32)
    max_val = jnp.maximum(-x, 0.0)
    loss = x - x * t + max_val + jnp.log(
        jnp.exp(-max_val) + jnp.exp(-x - max_val))
    invprobs = jax.nn.log_sigmoid(-x * (t * 2.0 - 1.0))
    focal = balance_param * jnp.exp(invprobs * focusing_param) * loss
    k = int(percent * focal.shape[0])
    lowest = -lax.top_k(-focal, k)[0]
    return jnp.mean(lowest)


if __name__ == "__main__":
    key = jax.random.PRNGKey(0)
    k1, k2 = jax.random.split(key)

    n_samples = 64                                   # -> 128 flat elements, k=64
    output = jax.random.normal(k1, (n_samples, NUM_CLASSES), dtype=jnp.float32)
    target = jax.random.randint(k2, (n_samples,), 0, NUM_CLASSES,
                                dtype=jnp.int32)

    loss = focal_ohem_low_loss(output, target)
    loss = jax.block_until_ready(loss)

    ref = _reference(output, target)
    assert jnp.allclose(loss, ref, rtol=1e-5, atol=1e-6), (loss, ref)

    print("KERNEL_OK")
</pallas_src>

<mosaic_0001>
module attributes {stable_mosaic.version = 11 : i64} {
  func.func @_focal_kernel(%arg0: i32, %arg1: memref<8x128xf32, #tpu.memory_space<vmem>>, %arg2: memref<8x128xf32, #tpu.memory_space<vmem>>, %arg3: memref<8x128xf32, #tpu.memory_space<vmem>>) attributes {dimension_semantics = [#tpu.dimension_semantics<parallel>], iteration_bounds = array<i64: 1>, scalar_prefetch = 0 : i64, scratch_operands = 0 : i64, tpu.core_type = #tpu.core_type<tc>, window_params = [{transform_indices = @transform_0, window_bounds = array<i64: 8, 128>}, {transform_indices = @transform_1, window_bounds = array<i64: 8, 128>}, {transform_indices = @transform_2, window_bounds = array<i64: 8, 128>}]} {
    %c0 = arith.constant 0 : index
    %c0_0 = arith.constant 0 : index
    %0 = vector.load %arg1[%c0, %c0_0] : memref<8x128xf32, #tpu.memory_space<vmem>>, vector<8x128xf32>
    %c0_1 = arith.constant 0 : index
    %c0_2 = arith.constant 0 : index
    %1 = vector.load %arg2[%c0_1, %c0_2] : memref<8x128xf32, #tpu.memory_space<vmem>>, vector<8x128xf32>
    %cst = arith.constant 0.000000e+00 : f32
    %2 = vector.broadcast %cst : f32 to vector<8x128xf32>
    %3 = arith.subf %2, %0 : vector<8x128xf32>
    %cst_3 = arith.constant 0.000000e+00 : f32
    %4 = vector.broadcast %cst_3 : f32 to vector<8x128xf32>
    %5 = arith.maximumf %3, %4 : vector<8x128xf32>
    %6 = arith.mulf %0, %1 : vector<8x128xf32>
    %7 = arith.subf %0, %6 : vector<8x128xf32>
    %8 = arith.addf %7, %5 : vector<8x128xf32>
    %cst_4 = arith.constant 0.000000e+00 : f32
    %9 = vector.broadcast %cst_4 : f32 to vector<8x128xf32>
    %10 = arith.subf %9, %5 : vector<8x128xf32>
    %11 = math.exp %10 : vector<8x128xf32>
    %12 = arith.subf %3, %5 : vector<8x128xf32>
    %13 = math.exp %12 : vector<8x128xf32>
    %14 = arith.addf %11, %13 : vector<8x128xf32>
    %15 = math.log %14 : vector<8x128xf32>
    %16 = arith.addf %8, %15 : vector<8x128xf32>
    %cst_5 = arith.constant 2.000000e+00 : f32
    %17 = vector.broadcast %cst_5 : f32 to vector<8x128xf32>
    %18 = arith.mulf %17, %1 : vector<8x128xf32>
    %cst_6 = arith.constant 1.000000e+00 : f32
    %19 = vector.broadcast %cst_6 : f32 to vector<8x128xf32>
    %20 = arith.subf %19, %18 : vector<8x128xf32>
    %21 = arith.mulf %0, %20 : vector<8x128xf32>
    %cst_7 = arith.constant 0.000000e+00 : f32
    %22 = vector.broadcast %cst_7 : f32 to vector<8x128xf32>
    %23 = arith.minimumf %21, %22 : vector<8x128xf32>
    %24 = math.absf %21 : vector<8x128xf32>
    %cst_8 = arith.constant 0.000000e+00 : f32
    %25 = vector.broadcast %cst_8 : f32 to vector<8x128xf32>
    %26 = arith.subf %25, %24 : vector<8x128xf32>
    %27 = math.exp %26 : vector<8x128xf32>
    %cst_9 = arith.constant 1.000000e+00 : f32
    %28 = vector.broadcast %cst_9 : f32 to vector<8x128xf32>
    %29 = arith.addf %28, %27 : vector<8x128xf32>
    %30 = math.log %29 : vector<8x128xf32>
    %31 = arith.subf %23, %30 : vector<8x128xf32>
    %cst_10 = arith.constant 2.000000e+00 : f32
    %32 = vector.broadcast %cst_10 : f32 to vector<8x128xf32>
    %33 = arith.mulf %31, %32 : vector<8x128xf32>
    %34 = math.exp %33 : vector<8x128xf32>
    %cst_11 = arith.constant 2.500000e-01 : f32
    %35 = vector.broadcast %cst_11 : f32 to vector<8x128xf32>
    %36 = arith.mulf %35, %34 : vector<8x128xf32>
    %37 = arith.mulf %36, %16 : vector<8x128xf32>
    %c0_12 = arith.constant 0 : index
    %c0_13 = arith.constant 0 : index
    %38 = vector.load %arg3[%c0_12, %c0_13] : memref<8x128xf32, #tpu.memory_space<vmem>>, vector<8x128xf32>
    tpu.vector_store %arg3[%c0_12, %c0_13], %37 {strides = array<i32>} : memref<8x128xf32, #tpu.memory_space<vmem>>, vector<8x128xf32>,
    return
  }
  func.func @transform_0(%arg0: i32) -> (i32, i32) {
    %c0_i32 = arith.constant 0 : i32
    %c0_i32_0 = arith.constant 0 : i32
    return %arg0, %c0_i32 : i32, i32
  }
  func.func @transform_1(%arg0: i32) -> (i32, i32) {
    %c0_i32 = arith.constant 0 : i32
    %c0_i32_0 = arith.constant 0 : i32
    return %arg0, %c0_i32 : i32, i32
  }
  func.func @transform_2(%arg0: i32) -> (i32, i32) {
    %c0_i32 = arith.constant 0 : i32
    %c0_i32_0 = arith.constant 0 : i32
    return %arg0, %c0_i32 : i32, i32
  }
}

</mosaic_0001>

<bundles_post_ra>
// kernel: tpu_custom_call.1
= control target key start
LH: loop header
LB: loop body
LE: loop exit
PB: predicated region body
PF: predicated region fallthrough
CT: control target
= control target key end

     0   :  { %7 = vsyncpa [#allocation3], 0  ;;  %s195_s0 = inlined_call_operand.hbm [shape: f32[8,128], index: 0, kind: input, shape index: {}]   ;;  %s196_s1 = inlined_call_operand.hbm [shape: f32[8,128], index: 1, kind: input, shape index: {}]   ;;  %s197_s2 = inlined_call_operand.hbm [shape: f32[8,128], index: 2, kind: output, shape index: {}]  }
   0x1   :  { %8 = vsyncpa [#allocation6], 0 }
   0x2   :  { %9 = vsyncpa [#allocation4], 0  ;;  %s168_s9 = smov [#allocation2]   ;;  %s169_s11 = smov [#allocation5]  }
   0x3   :  { %s16_s10 = sshll.u32 %s168_s9, 4  ;;  %s26_s12 = sshll.u32 %s169_s11, 4  ;;  %s17_s10 = int_to_ptr.vmem [resolvable:$true] %s16_s10  ;;  %s27_s12 = int_to_ptr.vmem [resolvable:$true] %s26_s12 }
   0x4   :  { %s110_s13 = scalar_lea.vmem %s17_s10, 128  ;;  %p115_p1 = scmp.lt.s32.totalorder %s17_s10, %s17_s10 }
   0x5   :  { %p111_p0 = scmp.ne.s32.totalorder %s17_s10, %s110_s13  ;;  %p116_p2 = scmp.lt.s32.totalorder %s110_s13, %s110_s13 }
   0x7   :  { %p117_p3 = por %p116_p2, %p115_p1 }
   0x9   :  { %p118_p4 = pnand %p117_p3, %p111_p0 }
   0xb   :  { %121 = shalt.err (!%p118_p4)
}
   0xc   :  { %19 = dma.hbm_to_vmem [thread:$0]  %s195_s0, 128, %s17_s10, [#allocation3]  }
   0xd   :  { %s130_s16 = scalar_lea.vmem %s27_s12, 128  ;;  %p135_p6 = scmp.lt.s32.totalorder %s27_s12, %s27_s12 }
   0xe   :  { %p131_p5 = scmp.ne.s32.totalorder %s27_s12, %s130_s16  ;;  %p136_p7 = scmp.lt.s32.totalorder %s130_s16, %s130_s16 }
  0x10   :  { %p137_p8 = por %p136_p7, %p135_p6 }
  0x12   :  { %p138_p9 = pnand %p137_p8, %p131_p5 }
  0x14   :  { %141 = shalt.err (!%p138_p9)
}
  0x15   :  { %29 = dma.hbm_to_vmem [thread:$0]  %s196_s1, 128, %s27_s12, [#allocation6]  }
  0x16   :  { %162 = dma.done.wait [#allocation3], 128  }
  0x17   :  { %163 = vsyncadd [#allocation3], 4294967168 }
  0x18   :  { %164 = dma.done.wait [#allocation6], 128  }
  0x19   :  { %165 = vsyncadd [#allocation6], 4294967168  ;;  %v37_v0 = vld [vmem:[#allocation5] sm:$0xff]  ;;  %v36_v2 = vld [vmem:[#allocation2] sm:$0xff]  ;;  %s170_s0 = smov [#allocation7]  }
  0x1a   :  { %v53_v1 = vmul.f32 2.0, %v37_v0  ;;  %v38_v5 = vsub.f32 0.0, %v36_v2  ;;  %v40_v25 = vmul.f32 %v37_v0, %v36_v2  ;;  %s77_s1 = sshll.u32 %s170_s0, 4  ;;  %s78_s1 = int_to_ptr.vmem [resolvable:$true] %s77_s1 }
  0x1b   :  { %s142_s19 = scalar_lea.vmem %s78_s1, 128  ;;  %p147_p11 = scmp.lt.s32.totalorder %s78_s1, %s78_s1 }
  0x1c   :  { %v54_v3 = vsub.f32 1.0, %v53_v1  ;;  %v39_v8 = vmax.f32 %v38_v5, 0.0  ;;  %v41_v26 = vsub.f32 %v36_v2, %v40_v25  ;;  %p143_p10 = scmp.ne.s32.totalorder %s78_s1, %s142_s19  ;;  %p148_p12 = scmp.lt.s32.totalorder %s142_s19, %s142_s19 }
  0x1e   :  { %v55_v4 = vmul.f32 %v54_v3, %v36_v2  ;;  %v43_v10 = vsub.f32 0.0, %v39_v8  ;;  %v46_v11 = vsub.f32 %v38_v5, %v39_v8  ;;  %v42_v28 = vadd.f32 %v41_v26, %v39_v8  ;;  %p149_p13 = por %p148_p12, %p147_p11 }
  0x20   :  { %v57_v6 = vand.u32 2147483647, %v55_v4  ;;  %v44_v12 = vmul.f32 1.442695, %v43_v10  ;;  %v47_v13 = vmul.f32 1.442695, %v46_v11  ;;  %p150_p0 = pnand %p149_p13, %p143_p10 }
  0x21   :  { %v56_v19 = vmin.f32 %v55_v4, 0.0 }
  0x22   :  { %v58_v7 = vsub.f32 0.0, %v57_v6 }
  0x24   :  { %v59_v9 = vmul.f32 1.442695, %v58_v7 }
  0x26   :  { %90 = vpow2.f32 %v59_v9 }
  0x27   :  { %92 = vpow2.f32 %v44_v12 }
  0x28   :  { %94 = vpow2.f32 %v47_v13 }
  0x33   :  { %v91_v14 = vpop.eup %90 }
  0x34   :  { %v61_v15 = vadd.f32 1.0, %v91_v14  ;;  %v93_v16 = vpop.eup %92 }
  0x35   :  { %v95_v17 = vpop.eup %94 }
  0x36   :  { %96 = vlog2.f32 %v61_v15  ;;  %v49_v18 = vadd.f32 %v95_v17, %v93_v16 }
  0x38   :  { %98 = vlog2.f32 %v49_v18 }
  0x43   :  { %v97_v20 = vpop.eup %96 }
  0x44   :  { %v63_v21 = vmul.f32 0.6931472, %v97_v20 }
  0x45   :  { %v99_v27 = vpop.eup %98 }
  0x46   :  { %v64_v22 = vsub.f32 %v56_v19, %v63_v21  ;;  %v51_v29 = vmul.f32 0.6931472, %v99_v27 }
  0x48   :  { %v65_v23 = vmul.f32 2.0, %v64_v22  ;;  %v52_v30 = vadd.f32 %v51_v29, %v42_v28 }
  0x4a   :  { %v66_v24 = vmul.f32 1.442695, %v65_v23 }
  0x4c   :  { %100 = vpow2.f32 %v66_v24 }
  0x59   :  { %v101_v31 = vpop.eup %100 }
  0x5a   :  { %v68_v32 = vmul.f32 0.25, %v101_v31 }
  0x5c   :  { %v69_v33 = vmul.f32 %v68_v32, %v52_v30 }
  0x5e   :  { %70 = vst [vmem:[#allocation7] sm:$0xff] %v69_v33 }
  0x5f   :  { %153 = shalt.err (!%p150_p0)
}
  0x60   :  { %80 = dma.vmem_to_hbm [thread:$0]  %s78_s1, 128, %s197_s2, [#allocation4]  }
  0x61   :  { %166 = dma.done.wait [#allocation4], 128  }
  0x62   :  { %167 = vsyncadd [#allocation4], 4294967168 }
  0x63   :  { %84 = vsyncpa [#allocation3], 1 }
  0x64   :  { %85 = vsyncpa [#allocation6], 1 }
  0x65   :  { %86 = vsyncpa [#allocation4], 1 }

</bundles_post_ra>
